<compile_context>
chip_gen: v7x
topology: tpu7x:2x2x1
jax: 0.10.0
libtpu: 0.0.40
codegen_flags: <defaults>
</compile_context>

<pallas_src>
import functools

import jax
import jax.numpy as jnp
from jax.experimental import pallas as pl
from jax.experimental.pallas import tpu as pltpu

EMB = 100
D1, D2, D3, D4 = 256, 128, 64, 32
NCLS = 4
EMB_PAD = 128      # pad fc1 contraction dim to lane width
OUT_PAD = 128      # lane-dense output; wrapper slices [:, :NCLS]


def _dense_ext_kernel(counts_ref, emb_ref,
                      w1_ref, b1_ref,
                      w2_ref, b2_ref,
                      w3_ref, b3_ref,
                      w4_ref, b4_ref,
                      w5_ref, b5_ref,
                      out_ref):
    """Fused: embedding-sum (counts @ table) + fc1..fc4 (+ReLU) + fc5, all in VMEM."""
    # sum_t embedding[token_t]  ==  counts @ embedding_table   (one MXU matmul)
    x = jnp.dot(counts_ref[...], emb_ref[...], preferred_element_type=jnp.float32)

    h = jnp.dot(x, w1_ref[...], preferred_element_type=jnp.float32) + b1_ref[...]
    h = jnp.maximum(h, 0.0)
    h = jnp.dot(h, w2_ref[...], preferred_element_type=jnp.float32) + b2_ref[...]
    h = jnp.maximum(h, 0.0)
    h = jnp.dot(h, w3_ref[...], preferred_element_type=jnp.float32) + b3_ref[...]
    h = jnp.maximum(h, 0.0)
    h = jnp.dot(h, w4_ref[...], preferred_element_type=jnp.float32) + b4_ref[...]
    h = jnp.maximum(h, 0.0)

    out_ref[...] = (jnp.dot(h, w5_ref[...], preferred_element_type=jnp.float32)
                    + b5_ref[...])


def prepare_params(params):
    """One-time prep: transpose to (in, out), lane-align, pad.  Not per-call."""
    vocab = params["embeddings"].shape[0]
    vocab_pad = pl.cdiv(max(vocab, 1), 128) * 128

    emb = jnp.zeros((vocab_pad, EMB_PAD), jnp.float32)
    emb = emb.at[:vocab, :EMB].set(params["embeddings"].astype(jnp.float32))

    w1 = jnp.zeros((EMB_PAD, D1), jnp.float32).at[:EMB, :].set(params["w1"].T)
    w5 = jnp.zeros((D4, OUT_PAD), jnp.float32).at[:, :NCLS].set(params["w5"].T)
    b5 = jnp.zeros((1, OUT_PAD), jnp.float32).at[:, :NCLS].set(params["b5"][None, :])

    return {
        "emb": emb,
        "w1": w1,                 "b1": params["b1"].reshape(1, D1),
        "w2": params["w2"].T,     "b2": params["b2"].reshape(1, D2),
        "w3": params["w3"].T,     "b3": params["b3"].reshape(1, D3),
        "w4": params["w4"].T,     "b4": params["b4"].reshape(1, D4),
        "w5": w5,                 "b5": b5,
    }


@functools.partial(jax.jit, static_argnames=("block_b",))
def dense_extension_forward(tokens, prep, block_b=256):
    """tokens: (B, T) int32 -> logits (B, 4) float32."""
    B, T = tokens.shape
    vocab_pad = prep["emb"].shape[0]

    # Batch tile: multiple of 8, clamped for small batches.
    b_ceil8 = ((B + 7) // 8) * 8
    blk = max(8, min(int(block_b), b_ceil8))
    blk = ((blk + 7) // 8) * 8
    b_pad = pl.cdiv(B, blk) * blk

    # (B_pad, vocab_pad) token-count matrix: the only per-call activation DMA.
    counts = jnp.zeros((b_pad, vocab_pad), jnp.float32)
    counts = counts.at[jnp.arange(B)[:, None], tokens].add(1.0)

    def resident(arr):  # weight/bias: full-shape block, same index every step
        return pl.BlockSpec(arr.shape, lambda i: (0, 0))

    out = pl.pallas_call(
        _dense_ext_kernel,
        out_shape=jax.ShapeDtypeStruct((b_pad, OUT_PAD), jnp.float32),
        grid=(b_pad // blk,),
        in_specs=[
            pl.BlockSpec((blk, vocab_pad), lambda i: (i, 0)),
            resident(prep["emb"]),
            resident(prep["w1"]), resident(prep["b1"]),
            resident(prep["w2"]), resident(prep["b2"]),
            resident(prep["w3"]), resident(prep["b3"]),
            resident(prep["w4"]), resident(prep["b4"]),
            resident(prep["w5"]), resident(prep["b5"]),
        ],
        out_specs=pl.BlockSpec((blk, OUT_PAD), lambda i: (i, 0)),
        compiler_params=pltpu.CompilerParams(
            dimension_semantics=("parallel",)),
    )(counts, prep["emb"],
      prep["w1"], prep["b1"], prep["w2"], prep["b2"],
      prep["w3"], prep["b3"], prep["w4"], prep["b4"],
      prep["w5"], prep["b5"])

    return out[:B, :NCLS]


def _ref_forward(tokens, params):
    """Pure-JAX reference mirroring the PyTorch forward (eval mode)."""
    x = params["embeddings"][tokens].astype(jnp.float32)       # (B, T, EMB)
    x = jnp.sum(x, axis=1)                                      # (B, EMB)
    x = jnp.maximum(x @ params["w1"].T + params["b1"], 0.0)
    x = jnp.maximum(x @ params["w2"].T + params["b2"], 0.0)
    x = jnp.maximum(x @ params["w3"].T + params["b3"], 0.0)
    x = jnp.maximum(x @ params["w4"].T + params["b4"], 0.0)
    return x @ params["w5"].T + params["b5"]


def init_params(key, vocab=50):
    ks = jax.random.split(key, 11)
    s = 0.1
    return {
        "embeddings": jax.random.normal(ks[0], (vocab, EMB), jnp.float32) * s,
        "w1": jax.random.normal(ks[1], (D1, EMB), jnp.float32) * s,
        "b1": jax.random.normal(ks[2], (D1,), jnp.float32) * s,
        "w2": jax.random.normal(ks[3], (D2, D1), jnp.float32) * s,
        "b2": jax.random.normal(ks[4], (D2,), jnp.float32) * s,
        "w3": jax.random.normal(ks[5], (D3, D2), jnp.float32) * s,
        "b3": jax.random.normal(ks[6], (D3,), jnp.float32) * s,
        "w4": jax.random.normal(ks[7], (D4, D3), jnp.float32) * s,
        "b4": jax.random.normal(ks[8], (D4,), jnp.float32) * s,
        "w5": jax.random.normal(ks[9], (NCLS, D4), jnp.float32) * s,
        "b5": jax.random.normal(ks[10], (NCLS,), jnp.float32) * s,
    }


if __name__ == "__main__":
    key = jax.random.PRNGKey(0)
    pk, tk = jax.random.split(key)
    params = init_params(pk, vocab=50)
    prep = prepare_params(params)        # one-time weight prep (not per call)

    B, T = 2, 8
    tokens = jax.random.randint(tk, (B, T), 1, 50, dtype=jnp.int32)
    # introduce some padding tokens (id 0) like a real padded batch
    # (no padding_idx in the module, so they DO contribute to the sum)
    tokens = tokens.at[0, 5:].set(0)
    tokens = tokens.at[1, 7:].set(0)

    out = dense_extension_forward(tokens, prep)
    out = jax.block_until_ready(out)

    ref = _ref_forward(tokens, params)
    assert out.shape == (B, NCLS)
    assert jnp.allclose(out, ref, rtol=1e-3, atol=1e-3), (out, ref)

    print("KERNEL_OK")
</pallas_src>

<mosaic_0001>
module attributes {stable_mosaic.version = 11 : i64} {
  func.func private @main(%arg0: i32) attributes {dimension_semantics = [#tpu.dimension_semantics<core_parallel>], iteration_bounds = array<i64: 2>, tpu.core_type = #tpu.core_type<sc_scalar_subcore>, window_params = []} {
    return
  }
}

module attributes {stable_mosaic.version = 11 : i64} {
  func.func private @main(%arg0: i32) attributes {dimension_semantics = [#tpu.dimension_semantics<core_parallel>], iteration_bounds = array<i64: 2>, tpu.core_type = #tpu.core_type<sc_scalar_subcore>, window_params = []} {
    return
  }
}

module attributes {stable_mosaic.version = 11 : i64} {
  func.func @_dense_ext_kernel(%arg0: i32, %arg1: memref<8x128xf32, #tpu.memory_space<vmem>>, %arg2: memref<128x128xf32, #tpu.memory_space<vmem>>, %arg3: memref<128x256xf32, #tpu.memory_space<vmem>>, %arg4: memref<1x256xf32, #tpu.memory_space<vmem>>, %arg5: memref<256x128xf32, #tpu.memory_space<vmem>>, %arg6: memref<1x128xf32, #tpu.memory_space<vmem>>, %arg7: memref<128x64xf32, #tpu.memory_space<vmem>>, %arg8: memref<1x64xf32, #tpu.memory_space<vmem>>, %arg9: memref<64x32xf32, #tpu.memory_space<vmem>>, %arg10: memref<1x32xf32, #tpu.memory_space<vmem>>, %arg11: memref<32x128xf32, #tpu.memory_space<vmem>>, %arg12: memref<1x128xf32, #tpu.memory_space<vmem>>, %arg13: memref<8x128xf32, #tpu.memory_space<vmem>>) attributes {dimension_semantics = [#tpu.dimension_semantics<parallel>], iteration_bounds = array<i64: 1>, scalar_prefetch = 0 : i64, scratch_operands = 0 : i64, tpu.core_type = #tpu.core_type<tc>, window_params = [{transform_indices = @transform_0, window_bounds = array<i64: 8, 128>}, {pipeline_mode = #tpu.pipeline_mode<synchronous>, transform_indices = @transform_1, window_bounds = array<i64: 128, 128>}, {pipeline_mode = #tpu.pipeline_mode<synchronous>, transform_indices = @transform_2, window_bounds = array<i64: 128, 256>}, {pipeline_mode = #tpu.pipeline_mode<synchronous>, transform_indices = @transform_3, window_bounds = array<i64: 1, 256>}, {pipeline_mode = #tpu.pipeline_mode<synchronous>, transform_indices = @transform_4, window_bounds = array<i64: 256, 128>}, {pipeline_mode = #tpu.pipeline_mode<synchronous>, transform_indices = @transform_5, window_bounds = array<i64: 1, 128>}, {pipeline_mode = #tpu.pipeline_mode<synchronous>, transform_indices = @transform_6, window_bounds = array<i64: 128, 64>}, {pipeline_mode = #tpu.pipeline_mode<synchronous>, transform_indices = @transform_7, window_bounds = array<i64: 1, 64>}, {pipeline_mode = #tpu.pipeline_mode<synchronous>, transform_indices = @transform_8, window_bounds = array<i64: 64, 32>}, {pipeline_mode = #tpu.pipeline_mode<synchronous>, transform_indices = @transform_9, window_bounds = array<i64: 1, 32>}, {pipeline_mode = #tpu.pipeline_mode<synchronous>, transform_indices = @transform_10, window_bounds = array<i64: 32, 128>}, {pipeline_mode = #tpu.pipeline_mode<synchronous>, transform_indices = @transform_11, window_bounds = array<i64: 1, 128>}, {transform_indices = @transform_12, window_bounds = array<i64: 8, 128>}]} {
    %c0 = arith.constant 0 : index
    %c0_0 = arith.constant 0 : index
    %0 = vector.load %arg1[%c0, %c0_0] : memref<8x128xf32, #tpu.memory_space<vmem>>, vector<8x128xf32>
    %c0_1 = arith.constant 0 : index
    %c0_2 = arith.constant 0 : index
    %1 = vector.load %arg2[%c0_1, %c0_2] : memref<128x128xf32, #tpu.memory_space<vmem>>, vector<128x128xf32>
    %cst = arith.constant dense<0.000000e+00> : vector<8x128xf32>
    %2 = tpu.matmul %0, %1, %cst {dimension_numbers = #tpu.dot_dimension_numbers<[1], [0], [0], [1], [0, 0, 1, 1], [], []>} : vector<8x128xf32>, vector<128x128xf32>, vector<8x128xf32> -> vector<8x128xf32>
    %c0_3 = arith.constant 0 : index
    %c0_4 = arith.constant 0 : index
    %3 = vector.load %arg3[%c0_3, %c0_4] : memref<128x256xf32, #tpu.memory_space<vmem>>, vector<128x256xf32>
    %cst_5 = arith.constant dense<0.000000e+00> : vector<8x256xf32>
    %4 = tpu.matmul %2, %3, %cst_5 {dimension_numbers = #tpu.dot_dimension_numbers<[1], [0], [0], [1], [0, 0, 1, 1], [], []>} : vector<8x128xf32>, vector<128x256xf32>, vector<8x256xf32> -> vector<8x256xf32>
    %c0_6 = arith.constant 0 : index
    %c0_7 = arith.constant 0 : index
    %5 = vector.load %arg4[%c0_6, %c0_7] : memref<1x256xf32, #tpu.memory_space<vmem>>, vector<1x256xf32>
    %6 = vector.broadcast %5 : vector<1x256xf32> to vector<8x256xf32>
    %7 = arith.addf %4, %6 : vector<8x256xf32>
    %cst_8 = arith.constant 0.000000e+00 : f32
    %8 = vector.broadcast %cst_8 : f32 to vector<8x256xf32>
    %9 = arith.maximumf %7, %8 : vector<8x256xf32>
    %c0_9 = arith.constant 0 : index
    %c0_10 = arith.constant 0 : index
    %10 = vector.load %arg5[%c0_9, %c0_10] : memref<256x128xf32, #tpu.memory_space<vmem>>, vector<256x128xf32>
    %cst_11 = arith.constant dense<0.000000e+00> : vector<8x128xf32>
    %11 = tpu.matmul %9, %10, %cst_11 {dimension_numbers = #tpu.dot_dimension_numbers<[1], [0], [0], [1], [0, 0, 1, 1], [], []>} : vector<8x256xf32>, vector<256x128xf32>, vector<8x128xf32> -> vector<8x128xf32>
    %c0_12 = arith.constant 0 : index
    %c0_13 = arith.constant 0 : index
    %12 = vector.load %arg6[%c0_12, %c0_13] : memref<1x128xf32, #tpu.memory_space<vmem>>, vector<1x128xf32>
    %13 = vector.broadcast %12 : vector<1x128xf32> to vector<8x128xf32>
    %14 = arith.addf %11, %13 : vector<8x128xf32>
    %cst_14 = arith.constant 0.000000e+00 : f32
    %15 = vector.broadcast %cst_14 : f32 to vector<8x128xf32>
    %16 = arith.maximumf %14, %15 : vector<8x128xf32>
    %c0_15 = arith.constant 0 : index
    %c0_16 = arith.constant 0 : index
    %17 = vector.load %arg7[%c0_15, %c0_16] : memref<128x64xf32, #tpu.memory_space<vmem>>, vector<128x64xf32>
    %cst_17 = arith.constant dense<0.000000e+00> : vector<8x64xf32>
    %18 = tpu.matmul %16, %17, %cst_17 {dimension_numbers = #tpu.dot_dimension_numbers<[1], [0], [0], [1], [0, 0, 1, 1], [], []>} : vector<8x128xf32>, vector<128x64xf32>, vector<8x64xf32> -> vector<8x64xf32>
    %c0_18 = arith.constant 0 : index
    %c0_19 = arith.constant 0 : index
    %19 = vector.load %arg8[%c0_18, %c0_19] : memref<1x64xf32, #tpu.memory_space<vmem>>, vector<1x64xf32>
    %20 = vector.broadcast %19 : vector<1x64xf32> to vector<8x64xf32>
    %21 = arith.addf %18, %20 : vector<8x64xf32>
    %cst_20 = arith.constant 0.000000e+00 : f32
    %22 = vector.broadcast %cst_20 : f32 to vector<8x64xf32>
    %23 = arith.maximumf %21, %22 : vector<8x64xf32>
    %c0_21 = arith.constant 0 : index
    %c0_22 = arith.constant 0 : index
    %24 = vector.load %arg9[%c0_21, %c0_22] : memref<64x32xf32, #tpu.memory_space<vmem>>, vector<64x32xf32>
    %cst_23 = arith.constant dense<0.000000e+00> : vector<8x32xf32>
    %25 = tpu.matmul %23, %24, %cst_23 {dimension_numbers = #tpu.dot_dimension_numbers<[1], [0], [0], [1], [0, 0, 1, 1], [], []>} : vector<8x64xf32>, vector<64x32xf32>, vector<8x32xf32> -> vector<8x32xf32>
    %c0_24 = arith.constant 0 : index
    %c0_25 = arith.constant 0 : index
    %26 = vector.load %arg10[%c0_24, %c0_25] : memref<1x32xf32, #tpu.memory_space<vmem>>, vector<1x32xf32>
    %27 = vector.broadcast %26 : vector<1x32xf32> to vector<8x32xf32>
    %28 = arith.addf %25, %27 : vector<8x32xf32>
    %cst_26 = arith.constant 0.000000e+00 : f32
    %29 = vector.broadcast %cst_26 : f32 to vector<8x32xf32>
    %30 = arith.maximumf %28, %29 : vector<8x32xf32>
    %c0_27 = arith.constant 0 : index
    %c0_28 = arith.constant 0 : index
    %31 = vector.load %arg11[%c0_27, %c0_28] : memref<32x128xf32, #tpu.memory_space<vmem>>, vector<32x128xf32>
    %cst_29 = arith.constant dense<0.000000e+00> : vector<8x128xf32>
    %32 = tpu.matmul %30, %31, %cst_29 {dimension_numbers = #tpu.dot_dimension_numbers<[1], [0], [0], [1], [0, 0, 1, 1], [], []>} : vector<8x32xf32>, vector<32x128xf32>, vector<8x128xf32> -> vector<8x128xf32>
    %c0_30 = arith.constant 0 : index
    %c0_31 = arith.constant 0 : index
    %33 = vector.load %arg12[%c0_30, %c0_31] : memref<1x128xf32, #tpu.memory_space<vmem>>, vector<1x128xf32>
    %34 = vector.broadcast %33 : vector<1x128xf32> to vector<8x128xf32>
    %35 = arith.addf %32, %34 : vector<8x128xf32>
    %c0_32 = arith.constant 0 : index
    %c0_33 = arith.constant 0 : index
    %36 = vector.load %arg13[%c0_32, %c0_33] : memref<8x128xf32, #tpu.memory_space<vmem>>, vector<8x128xf32>
    tpu.vector_store %arg13[%c0_32, %c0_33], %35 {strides = array<i32>} : memref<8x128xf32, #tpu.memory_space<vmem>>, vector<8x128xf32>,
    return
  }
  func.func @transform_0(%arg0: i32) -> (i32, i32) {
    %c0_i32 = arith.constant 0 : i32
    %c0_i32_0 = arith.constant 0 : i32
    return %arg0, %c0_i32 : i32, i32
  }
  func.func @transform_1(%arg0: i32) -> (i32, i32) {
    %c0_i32 = arith.constant 0 : i32
    %c0_i32_0 = arith.constant 0 : i32
    %c0_i32_1 = arith.constant 0 : i32
    return %c0_i32, %c0_i32_0 : i32, i32
  }
  func.func @transform_2(%arg0: i32) -> (i32, i32) {
    %c0_i32 = arith.constant 0 : i32
    %c0_i32_0 = arith.constant 0 : i32
    %c0_i32_1 = arith.constant 0 : i32
    return %c0_i32, %c0_i32_0 : i32, i32
  }
  func.func @transform_3(%arg0: i32) -> (i32, i32) {
    %c0_i32 = arith.constant 0 : i32
    %c0_i32_0 = arith.constant 0 : i32
    %c0_i32_1 = arith.constant 0 : i32
    return %c0_i32, %c0_i32_0 : i32, i32
  }
  func.func @transform_4(%arg0: i32) -> (i32, i32) {
    %c0_i32 = arith.constant 0 : i32
    %c0_i32_0 = arith.constant 0 : i32
    %c0_i32_1 = arith.constant 0 : i32
    return %c0_i32, %c0_i32_0 : i32, i32
  }
  func.func @transform_5(%arg0: i32) -> (i32, i32) {
    %c0_i32 = arith.constant 0 : i32
    %c0_i32_0 = arith.constant 0 : i32
    %c0_i32_1 = arith.constant 0 : i32
    return %c0_i32, %c0_i32_0 : i32, i32
  }
  func.func @transform_6(%arg0: i32) -> (i32, i32) {
    %c0_i32 = arith.constant 0 : i32
    %c0_i32_0 = arith.constant 0 : i32
    %c0_i32_1 = arith.constant 0 : i32
    return %c0_i32, %c0_i32_0 : i32, i32
  }
  func.func @transform_7(%arg0: i32) -> (i32, i32) {
    %c0_i32 = arith.constant 0 : i32
    %c0_i32_0 = arith.constant 0 : i32
    %c0_i32_1 = arith.constant 0 : i32
    return %c0_i32, %c0_i32_0 : i32, i32
  }
  func.func @transform_8(%arg0: i32) -> (i32, i32) {
    %c0_i32 = arith.constant 0 : i32
    %c0_i32_0 = arith.constant 0 : i32
    %c0_i32_1 = arith.constant 0 : i32
    return %c0_i32, %c0_i32_0 : i32, i32
  }
  func.func @transform_9(%arg0: i32) -> (i32, i32) {
    %c0_i32 = arith.constant 0 : i32
    %c0_i32_0 = arith.constant 0 : i32
    %c0_i32_1 = arith.constant 0 : i32
    return %c0_i32, %c0_i32_0 : i32, i32
  }
  func.func @transform_10(%arg0: i32) -> (i32, i32) {
    %c0_i32 = arith.constant 0 : i32
    %c0_i32_0 = arith.constant 0 : i32
    %c0_i32_1 = arith.constant 0 : i32
    return %c0_i32, %c0_i32_0 : i32, i32
  }
  func.func @transform_11(%arg0: i32) -> (i32, i32) {
    %c0_i32 = arith.constant 0 : i32
    %c0_i32_0 = arith.constant 0 : i32
    %c0_i32_1 = arith.constant 0 : i32
    return %c0_i32, %c0_i32_0 : i32, i32
  }
  func.func @transform_12(%arg0: i32) -> (i32, i32) {
    %c0_i32 = arith.constant 0 : i32
    %c0_i32_0 = arith.constant 0 : i32
    return %arg0, %c0_i32 : i32, i32
  }
}

</mosaic_0001>

<bundles_post_ra>
// kernel: dense_extension_forward.1
= control target key start
LH: loop header
LB: loop body
LE: loop exit
PB: predicated region body
PF: predicated region fallthrough
CT: control target
= control target key end

     0   :  { %17 = vsyncpa [#allocation3], 0  ;;  %s989_s21 = smov [#allocation2]   ;;  %s1443_s0 = inlined_call_operand.hbm [shape: f32[8,128], index: 0, kind: input, shape index: {}]   ;;  %s1444_s1 = inlined_call_operand.vmem [shape: f32[128,128], index: 1, kind: input, shape index: {}]   ;;  %s1445_s2 = inlined_call_operand.vmem [shape: f32[128,256], index: 2, kind: input, shape index: {}]   ;;  %s1446_s3 = inlined_call_operand.vmem [shape: f32[1,256], index: 3, kind: input, shape index: {}]   ;;  %s1447_s4 = inlined_call_operand.vmem [shape: f32[256,128], index: 4, kind: input, shape index: {}]   ;;  %s1448_s5 = inlined_call_operand.vmem [shape: f32[1,128], index: 5, kind: input, shape index: {}]   ;;  %s1449_s6 = inlined_call_operand.vmem [shape: f32[128,64], index: 6, kind: input, shape index: {}]   ;;  %s1450_s7 = inlined_call_operand.vmem [shape: f32[1,64], index: 7, kind: input, shape index: {}]   ;;  %s1451_s8 = inlined_call_operand.vmem [shape: f32[64,32], index: 8, kind: input, shape index: {}]   ;;  %s1452_s9 = inlined_call_operand.vmem [shape: f32[1,32], index: 9, kind: input, shape index: {}]   ;;  %s1453_s10 = inlined_call_operand.vmem [shape: f32[32,128], index: 10, kind: input, shape index: {}]   ;;  %s1454_s11 = inlined_call_operand.vmem [shape: f32[1,128], index: 11, kind: input, shape index: {}]   ;;  %s1455_s12 = inlined_call_operand.vmem [shape: f32[8,128], index: 12, kind: output, shape index: {}]  }
   0x1   :  { %s24_s22 = sshll.u32 %s989_s21, 4  ;;  %s965_s25 = scalar_lea.hbm %s1443_s0, 128  ;;  %s25_s22 = int_to_ptr.vmem [resolvable:$true] %s24_s22 }
   0x2   :  { %p966_p0 = scmp.ne.s32.totalorder %s1443_s0, %s965_s25  ;;  %p969_p1 = scmp.lt.u32.totalorder %s965_s25, %s1443_s0 }
   0x4   :  { %p971_p2 = pnand %p969_p1, %p966_p0 }
   0x6   :  { %974 = shalt.err (!%p971_p2)
}
   0x7   :  { %s975_s30 = scalar_lea.vmem %s25_s22, 128  ;;  %p980_p4 = scmp.lt.s32.totalorder %s25_s22, %s25_s22 }
   0x8   :  { %p976_p3 = scmp.ne.s32.totalorder %s25_s22, %s975_s30  ;;  %p981_p5 = scmp.lt.s32.totalorder %s975_s30, %s975_s30 }
   0xa   :  { %p982_p6 = por %p981_p5, %p980_p4 }
   0xc   :  { %p983_p7 = pnand %p982_p6, %p976_p3 }
   0xe   :  { %986 = shalt.err (!%p983_p7)
}
   0xf   :  { %27 = dma.hbm_to_vmem [thread:$0]  %s1443_s0, 128, %s25_s22, [#allocation3]  }
  0x10   :  { %987 = dma.done.wait [#allocation3], 128  }
  0x11   :  { %988 = vsyncadd [#allocation3], 4294967168  ;;  %v990_v0 = vmov 0.0|0.0   ;;  %vm991_vm0 = vmmov 0   ;;  %v992_v1 = vmov 0.0   ;;  %v54_v2 = vld [vmem:[%s1444_s1] sm:$0xff] }
  0x12   :  { %831 = vmatprep.subr.bf16.mxu0 %v990_v0  ;;  %763 = vmatprep.mubr.msk.f32.mxu0 %vm991_vm0, %v992_v1  ;;  %v55_v3 = vld [vmem:[%s1444_s1 + $0x8] sm:$0xff]  ;;  %v56_v4 = vld [vmem:[%s1444_s1 + $0x10] sm:$0xff]  ;;  %v57_v6 = vld [vmem:[%s1444_s1 + $0x18] sm:$0xff]  ;;  %vm476_vm1 = vcmask 523264   ;;  %vm562_vm2 = vcmask 261120  }
  0x13   :  { %248 = vmatprep.mubr.f32.mxu1 %v992_v1  ;;  %v832_v5 = vpack.c.bf16 %v55_v3, %v54_v2  ;;  %v835_v7 = vpack.c.bf16 %v57_v6, %v56_v4  ;;  %v58_v8 = vld [vmem:[%s1444_s1 + $0x20] sm:$0xff]  ;;  %v59_v9 = vld [vmem:[%s1444_s1 + $0x28] sm:$0xff]  ;;  %v60_v11 = vld [vmem:[%s1444_s1 + $0x30] sm:$0xff] }
  0x14   :  { %v141_v10 = vld [vmem:[%s1445_s2 + $0x8] sm:$0xff]  ;;  %v61_v12 = vld [vmem:[%s1444_s1 + $0x38] sm:$0xff]  ;;  %v140_v14 = vld [vmem:[%s1445_s2] sm:$0xff]  ;;  %v838_v16 = vpack.c.bf16 %v59_v9, %v58_v8 }
  0x15   :  { %833 = vmatpush3.bf16.msra.mxu0 %v832_v5  ;;  %v143_v13 = vld [vmem:[%s1445_s2 + $0x18] sm:$0xff]  ;;  %v142_v15 = vld [vmem:[%s1445_s2 + $0x10] sm:$0xff]  ;;  %v145_v19 = vld [vmem:[%s1445_s2 + $0x28] sm:$0xff]  ;;  %v841_v27 = vpack.c.bf16 %v61_v12, %v60_v11 }
  0x16   :  { %834 = vmatprep.subr.bf16.mxu0 %v990_v0  ;;  %v855_v17 = vpack.c.bf16 %v143_v13, %v141_v10  ;;  %v857_v18 = vpack.c.bf16 %v142_v15, %v140_v14  ;;  %v147_v20 = vld [vmem:[%s1445_s2 + $0x38] sm:$0xff]  ;;  %v144_v21 = vld [vmem:[%s1445_s2 + $0x20] sm:$0xff]  ;;  %v146_v23 = vld [vmem:[%s1445_s2 + $0x30] sm:$0xff] }
  0x17   :  { %v859_v22 = vpack.c.bf16 %v147_v20, %v145_v19  ;;  %v149_v24 = vld [vmem:[%s1445_s2 + $0x48] sm:$0xff]  ;;  %v151_v25 = vld [vmem:[%s1445_s2 + $0x58] sm:$0xff]  ;;  %v861_v26 = vpack.c.bf16 %v146_v23, %v144_v21  ;;  %v62_v28 = vld [vmem:[%s1444_s1 + $0x40] sm:$0xff] }
  0x18   :  { %856 = vmatprep.subr.bf16.mxu1 %v855_v17  ;;  %v863_v29 = vpack.c.bf16 %v151_v25, %v149_v24  ;;  %v148_v30 = vld [vmem:[%s1445_s2 + $0x40] sm:$0xff]  ;;  %v150_v31 = vld [vmem:[%s1445_s2 + $0x50] sm:$0xff]  ;;  %v63_v32 = vld [vmem:[%s1444_s1 + $0x48] sm:$0xff] }
  0x19   :  { %836 = vmatpush3.bf16.msra.mxu0 %v835_v7  ;;  %858 = vmatpush1.bf16.msra.mxu1 %v857_v18  ;;  %v153_v33 = vld [vmem:[%s1445_s2 + $0x68] sm:$0xff]  ;;  %v155_v34 = vld [vmem:[%s1445_s2 + $0x78] sm:$0xff]  ;;  %v865_v35 = vpack.c.bf16 %v150_v31, %v148_v30  ;;  %v844_v36 = vpack.c.bf16 %v63_v32, %v62_v28  ;;  %v64_v37 = vld [vmem:[%s1444_s1 + $0x50] sm:$0xff] }
  0x1a   :  { %837 = vmatprep.subr.bf16.mxu0 %v990_v0  ;;  %860 = vmatprep.subr.bf16.mxu1 %v859_v22  ;;  %v867_v38 = vpack.c.bf16 %v155_v34, %v153_v33  ;;  %v152_v39 = vld [vmem:[%s1445_s2 + $0x60] sm:$0xff]  ;;  %v154_v40 = vld [vmem:[%s1445_s2 + $0x70] sm:$0xff]  ;;  %v65_v41 = vld [vmem:[%s1444_s1 + $0x58] sm:$0xff] }
  0x1b   :  { %v157_v42 = vld [vmem:[%s1445_s2 + $0x88] sm:$0xff]  ;;  %v159_v43 = vld [vmem:[%s1445_s2 + $0x98] sm:$0xff]  ;;  %v869_v44 = vpack.c.bf16 %v154_v40, %v152_v39  ;;  %v847_v45 = vpack.c.bf16 %v65_v41, %v64_v37  ;;  %v66_v46 = vld [vmem:[%s1444_s1 + $0x60] sm:$0xff] }
  0x1c   :  { %v871_v47 = vpack.c.bf16 %v159_v43, %v157_v42  ;;  %v156_v48 = vld [vmem:[%s1445_s2 + $0x80] sm:$0xff]  ;;  %v158_v49 = vld [vmem:[%s1445_s2 + $0x90] sm:$0xff]  ;;  %v67_v50 = vld [vmem:[%s1444_s1 + $0x68] sm:$0xff] }
  0x1d   :  { %839 = vmatpush3.bf16.msra.mxu0 %v838_v16  ;;  %862 = vmatpush1.bf16.msra.mxu1 %v861_v26  ;;  %v161_v51 = vld [vmem:[%s1445_s2 + $0xa8] sm:$0xff]  ;;  %v163_v52 = vld [vmem:[%s1445_s2 + $0xb8] sm:$0xff]  ;;  %v873_v53 = vpack.c.bf16 %v158_v49, %v156_v48  ;;  %v850_v54 = vpack.c.bf16 %v67_v50, %v66_v46  ;;  %v68_v55 = vld [vmem:[%s1444_s1 + $0x70] sm:$0xff] }
  0x1e   :  { %840 = vmatprep.subr.bf16.mxu0 %v990_v0  ;;  %864 = vmatprep.subr.bf16.mxu1 %v863_v29  ;;  %v875_v56 = vpack.c.bf16 %v163_v52, %v161_v51  ;;  %v160_v57 = vld [vmem:[%s1445_s2 + $0xa0] sm:$0xff]  ;;  %v162_v58 = vld [vmem:[%s1445_s2 + $0xb0] sm:$0xff]  ;;  %v69_v59 = vld [vmem:[%s1444_s1 + $0x78] sm:$0xff] }
  0x1f   :  { %v165_v60 = vld [vmem:[%s1445_s2 + $0xc8] sm:$0xff]  ;;  %v167_v61 = vld [vmem:[%s1445_s2 + $0xd8] sm:$0xff]  ;;  %v877_v62 = vpack.c.bf16 %v162_v58, %v160_v57  ;;  %v853_v63 = vpack.c.bf16 %v69_v59, %v68_v55  ;;  %v164_v3 = vld [vmem:[%s1445_s2 + $0xc0] sm:$0xff] }
  0x20   :  { %v879_v2 = vpack.c.bf16 %v167_v61, %v165_v60  ;;  %v166_v4 = vld [vmem:[%s1445_s2 + $0xd0] sm:$0xff]  ;;  %v169_v5 = vld [vmem:[%s1445_s2 + $0xe8] sm:$0xff]  ;;  %v171_v6 = vld [vmem:[%s1445_s2 + $0xf8] sm:$0xff] }
  0x21   :  { %842 = vmatpush3.bf16.msra.mxu0 %v841_v27  ;;  %866 = vmatpush1.bf16.msra.mxu1 %v865_v35  ;;  %v881_v7 = vpack.c.bf16 %v166_v4, %v164_v3  ;;  %v53_v8 = vld [vmem:[#allocation2] sm:$0xff]  ;;  %v883_v9 = vpack.c.bf16 %v171_v6, %v169_v5  ;;  %v170_v11 = vld [vmem:[%s1445_s2 + $0xf0] sm:$0xff]  ;;  %v274_v14 = vld [vmem:[%s1447_s4 + $0x88] sm:$0xff] }
  0x22   :  { %843 = vmatprep.subr.bf16.mxu0 %v990_v0  ;;  %868 = vmatprep.subr.bf16.mxu1 %v867_v38  ;;  %v168_v10 = vld [vmem:[%s1445_s2 + $0xe0] sm:$0xff]  ;;  %v258_v17 = vld [vmem:[%s1447_s4 + $0x8] sm:$0xff]  ;;  %v275_v18 = vld [vmem:[%s1447_s4 + $0x90] sm:$0xff] }
  0x23   :  { %v885_v12 = vpack.c.bf16 %v170_v11, %v168_v10  ;;  %v273_v13 = vld [vmem:[%s1447_s4 + $0x80] sm:$0xff]  ;;  %v276_v19 = vld [vmem:[%s1447_s4 + $0x98] sm:$0xff]  ;;  %v259_v22 = vld [vmem:[%s1447_s4 + $0x10] sm:$0xff] }
  0x24   :  { %v257_v15 = vld [vmem:[%s1447_s4] sm:$0xff]  ;;  %v887_v16 = vpack.c.bf16 %v274_v14, %v273_v13  ;;  %v891_v21 = vpack.c.bf16 %v276_v19, %v275_v18  ;;  %v260_v23 = vld [vmem:[%s1447_s4 + $0x18] sm:$0xff]  ;;  %v278_v25 = vld [vmem:[%s1447_s4 + $0xa8] sm:$0xff]  ;;  %v174_v19 = vlaneseq }
  0x25   :  { %845 = vmatpush3.bf16.msra.mxu0 %v844_v36  ;;  %870 = vmatpush1.bf16.msra.mxu1 %v869_v44  ;;  %v889_v20 = vpack.c.bf16 %v258_v17, %v257_v15  ;;  %v277_v24 = vld [vmem:[%s1447_s4 + $0xa0] sm:$0xff]  ;;  %v893_v26 = vpack.c.bf16 %v260_v23, %v259_v22  ;;  %v262_v29 = vld [vmem:[%s1447_s4 + $0x28] sm:$0xff]  ;;  %v279_v30 = vld [vmem:[%s1447_s4 + $0xb0] sm:$0xff] }
  0x26   :  { %846 = vmatprep.subr.bf16.mxu0 %v990_v0  ;;  %872 = vmatprep.subr.bf16.mxu1 %v871_v47  ;;  %v895_v27 = vpack.c.bf16 %v278_v25, %v277_v24  ;;  %v261_v28 = vld [vmem:[%s1447_s4 + $0x20] sm:$0xff]  ;;  %v280_v31 = vld [vmem:[%s1447_s4 + $0xb8] sm:$0xff]  ;;  %v263_v34 = vld [vmem:[%s1447_s4 + $0x30] sm:$0xff] }
  0x27   :  { %v897_v32 = vpack.c.bf16 %v262_v29, %v261_v28  ;;  %v899_v33 = vpack.c.bf16 %v280_v31, %v279_v30  ;;  %v264_v35 = vld [vmem:[%s1447_s4 + $0x38] sm:$0xff]  ;;  %v281_v36 = vld [vmem:[%s1447_s4 + $0xc0] sm:$0xff]  ;;  %v282_v37 = vld [vmem:[%s1447_s4 + $0xc8] sm:$0xff] }
  0x28   :  { %v901_v38 = vpack.c.bf16 %v264_v35, %v263_v34  ;;  %v903_v39 = vpack.c.bf16 %v282_v37, %v281_v36  ;;  %v265_v40 = vld [vmem:[%s1447_s4 + $0x40] sm:$0xff]  ;;  %v266_v41 = vld [vmem:[%s1447_s4 + $0x48] sm:$0xff]  ;;  %v283_v42 = vld [vmem:[%s1447_s4 + $0xd0] sm:$0xff] }
  0x29   :  { %848 = vmatpush3.bf16.msra.mxu0 %v847_v45  ;;  %874 = vmatpush1.bf16.msra.mxu1 %v873_v53  ;;  %v284_v43 = vld [vmem:[%s1447_s4 + $0xd8] sm:$0xff]  ;;  %v905_v44 = vpack.c.bf16 %v266_v41, %v265_v40  ;;  %v267_v46 = vld [vmem:[%s1447_s4 + $0x50] sm:$0xff]  ;;  %v285_v48 = vld [vmem:[%s1447_s4 + $0xe0] sm:$0xff] }
  0x2a   :  { %849 = vmatprep.subr.bf16.mxu0 %v990_v0  ;;  %876 = vmatprep.subr.bf16.mxu1 %v875_v56  ;;  %v907_v45 = vpack.c.bf16 %v284_v43, %v283_v42  ;;  %v268_v47 = vld [vmem:[%s1447_s4 + $0x58] sm:$0xff]  ;;  %v286_v49 = vld [vmem:[%s1447_s4 + $0xe8] sm:$0xff]  ;;  %v287_v57 = vld [vmem:[%s1447_s4 + $0xf0] sm:$0xff] }
  0x2b   :  { %v909_v50 = vpack.c.bf16 %v268_v47, %v267_v46  ;;  %v911_v51 = vpack.c.bf16 %v286_v49, %v285_v48  ;;  %v270_v55 = vld [vmem:[%s1447_s4 + $0x68] sm:$0xff]  ;;  %v288_v58 = vld [vmem:[%s1447_s4 + $0xf8] sm:$0xff]  ;;  %v271_v60 = vld [vmem:[%s1447_s4 + $0x70] sm:$0xff] }
  0x2c   :  { %v915_v59 = vpack.c.bf16 %v288_v58, %v287_v57  ;;  %v272_v61 = vld [vmem:[%s1447_s4 + $0x78] sm:$0xff]  ;;  %v369_v3 = vld [vmem:[%s1449_s6 + $0x10] sm:$0xff]  ;;  %v375_v13 = vld [vmem:[%s1449_s6 + $0x40] sm:$0xff] }
  0x2d   :  { %851 = vmatpush3.bf16.msra.mxu0 %v850_v54  ;;  %878 = vmatpush1.bf16.msra.mxu1 %v877_v62  ;;  %v269_v54 = vld [vmem:[%s1447_s4 + $0x60] sm:$0xff]  ;;  %v917_v62 = vpack.c.bf16 %v272_v61, %v271_v60  ;;  %v370_v5 = vld [vmem:[%s1449_s6 + $0x18] sm:$0xff]  ;;  %v373_v10 = vld [vmem:[%s1449_s6 + $0x30] sm:$0xff] }
  0x2e   :  { %852 = vmatprep.subr.bf16.mxu0 %v990_v0  ;;  %880 = vmatprep.subr.bf16.mxu1 %v879_v2  ;;  %v913_v56 = vpack.c.bf16 %v270_v55, %v269_v54  ;;  %v368_v2 = vld [vmem:[%s1449_s6 + $0x8] sm:$0xff]  ;;  %v923_v6 = vpack.c.bf16 %v370_v5, %v369_v3  ;;  %v374_v11 = vld [vmem:[%s1449_s6 + $0x38] sm:$0xff]  ;;  %v172_v22 = vld [vmem:[%s1446_s3] sm:$0x3] }
  0x2f   :  { %v376_v14 = vld [vmem:[%s1449_s6 + $0x48] sm:$0xff]  ;;  %v378_v17 = vld [vmem:[%s1449_s6 + $0x58] sm:$0xff]  ;;  %v381_v35 = vld [vmem:[%s1449_s6 + $0x70] sm:$0xff] }
  0x30   :  { %v932_v15 = vpack.c.bf16 %v376_v14, %v375_v13  ;;  %v382_v36 = vld [vmem:[%s1449_s6 + $0x78] sm:$0xff]  ;;  %v463_v40 = vld [vmem:[%s1451_s8 + $0x10] sm:$0xff]  ;;  %v642_v48 = vld [vmem:[%s1448_s5] ss:$0 sm:$0xff] }
  0x31   :  { %854 = vmatpush3.bf16.msra.mxu0 %v853_v63  ;;  %882 = vmatpush1.bf16.msra.mxu1 %v881_v7  ;;  %v367_v63 = vld [vmem:[%s1449_s6] sm:$0xff]  ;;  %v941_v37 = vpack.c.bf16 %v382_v36, %v381_v35  ;;  %v464_v42 = vld [vmem:[%s1451_s8 + $0x18] sm:$0xff]  ;;  %v552_v57 = vld [vmem:[%s1453_s10 + $0x8] sm:$0xff] }
  0x32   :  { %884 = vmatprep.subr.bf16.mxu1 %v883_v9  ;;  %888 = vmatprep.subr.bf16.mxu0 %v887_v16  ;;  %v920_v4 = vpack.c.bf16 %v368_v2, %v367_v63  ;;  %v371_v7 = vld [vmem:[%s1449_s6 + $0x20] sm:$0xff]  ;;  %v377_v16 = vld [vmem:[%s1449_s6 + $0x50] sm:$0xff]  ;;  %v947_v43 = vpack.c.bf16 %v464_v42, %v463_v40  ;;  %v468_v54 = vld [vmem:[%s1451_s8 + $0x38] sm:$0xff] }
  0x33   :  { %v935_v18 = vpack.c.bf16 %v378_v17, %v377_v16  ;;  %v553_v63 = vld [vmem:[%s1453_s10 + $0x10] sm:$0xff]  ;;  %v554_v2 = vld [vmem:[%s1453_s10 + $0x18] sm:$0xff] }
  0x34   :  { %764 = vmatmul.mubr.f32.vlgmr.msra.gmra.mrb[0].mxu0 %v53_v8  ;;  %v372_v8 = vld [vmem:[%s1449_s6 + $0x28] sm:$0xff]  ;;  %v959_v3 = vpack.c.bf16 %v554_v2, %v553_v63 }
  0x35   :  { %886 = vmatpush1.bf16.msra.mxu1 %v885_v12  ;;  %890 = vmatpush3.bf16.msra.mxu0 %v889_v20  ;;  %v926_v9 = vpack.c.bf16 %v372_v8, %v371_v7  ;;  %v929_v12 = vpack.c.bf16 %v374_v11, %v373_v10  ;;  %v175_v20 = vshrl.u32 %v174_v19, 7  ;;  %v646_v8 = vld [vmem:[%s1454_s11] ss:$0 sm:$0xff] }
  0x36   :  { %919 = vmatprep.subr.bf16.mxu1 %v990_v0  ;;  %892 = vmatprep.subr.bf16.mxu0 %v891_v21 }
  0x37   :  { %v176_v21 = vsub.s32 0, %v175_v20  ;;  %v180_v23 = vsub.s32 1, %v175_v20 }
  0x39   :  { %894 = vmatpush3.bf16.msra.mxu0 %v893_v26  ;;  %v177_v24 = vrot.slane %v172_v22, %v176_v21  ;;  %v181_v25 = vrot.slane %v172_v22, %v180_v23 }
  0x3a   :  { %896 = vmatprep.subr.bf16.mxu0 %v895_v27 }
  0x3d   :  { %898 = vmatpush3.bf16.msra.mxu0 %v897_v32  ;;  %v379_v32 = vld [vmem:[%s1449_s6 + $0x60] sm:$0xff] }
  0x3e   :  { %900 = vmatprep.subr.bf16.mxu0 %v899_v33  ;;  %v380_v33 = vld [vmem:[%s1449_s6 + $0x68] sm:$0xff] }
  0x3f   :  { %v938_v34 = vpack.c.bf16 %v380_v33, %v379_v32 }
  0x41   :  { %902 = vmatpush3.bf16.msra.mxu0 %v901_v38  ;;  %v461_v38 = vld [vmem:[%s1451_s8] sm:$0xff] }
  0x42   :  { %904 = vmatprep.subr.bf16.mxu0 %v903_v39  ;;  %v462_v39 = vld [vmem:[%s1451_s8 + $0x8] sm:$0xff] }
  0x43   :  { %v944_v41 = vpack.c.bf16 %v462_v39, %v461_v38 }
  0x45   :  { %906 = vmatpush3.bf16.msra.mxu0 %v905_v44  ;;  %v465_v44 = vld [vmem:[%s1451_s8 + $0x20] sm:$0xff] }
  0x46   :  { %908 = vmatprep.subr.bf16.mxu0 %v907_v45  ;;  %v466_v45 = vld [vmem:[%s1451_s8 + $0x28] sm:$0xff] }
  0x47   :  { %v950_v46 = vpack.c.bf16 %v466_v45, %v465_v44 }
  0x49   :  { %910 = vmatpush3.bf16.msra.mxu0 %v909_v50 }
  0x4a   :  { %912 = vmatprep.subr.bf16.mxu0 %v911_v51 }
  0x4d   :  { %914 = vmatpush3.bf16.msra.mxu0 %v913_v56  ;;  %v551_v56 = vld [vmem:[%s1453_s10] sm:$0xff] }
  0x4e   :  { %916 = vmatprep.subr.bf16.mxu0 %v915_v59  ;;  %v956_v58 = vpack.c.bf16 %v552_v57, %v551_v56 }
  0x51   :  { %918 = vmatpush3.bf16.msra.mxu0 %v917_v62 }
  0x52   :  { %943 = vmatprep.subr.bf16.mxu0 %v990_v0 }
 0x107   :  { %v136_v52 = vpop.f32.mrb[0].mxu0 }
 0x108   :  { %v765_v53 = vpop.f32.mrb[1].mxu0  ;;  %249 = vmatmul.mubr.f32.vlgmr.msra.gmra.mrb[0].mxu1 %v136_v52 }
 0x109   :  { %798 = vmatprep.mubr.msk.f32.mxu1 %vm991_vm0, %v992_v1  ;;  %921 = vmatpush3.bf16.msra.mxu1 %v920_v4  ;;  %v467_v53 = vld [vmem:[%s1451_s8 + $0x30] sm:$0xff] }
 0x10a   :  { %922 = vmatprep.subr.bf16.mxu1 %v990_v0  ;;  %v953_v55 = vpack.c.bf16 %v468_v54, %v467_v53 }
 0x10d   :  { %924 = vmatpush3.bf16.msra.mxu1 %v923_v6 }
 0x10e   :  { %925 = vmatprep.subr.bf16.mxu1 %v990_v0 }
 0x111   :  { %927 = vmatpush3.bf16.msra.mxu1 %v926_v9 }
 0x112   :  { %928 = vmatprep.subr.bf16.mxu1 %v990_v0 }
 0x115   :  { %930 = vmatpush3.bf16.msra.mxu1 %v929_v12 }
 0x116   :  { %931 = vmatprep.subr.bf16.mxu1 %v990_v0 }
 0x119   :  { %933 = vmatpush3.bf16.msra.mxu1 %v932_v15 }
 0x11a   :  { %934 = vmatprep.subr.bf16.mxu1 %v990_v0 }
 0x11d   :  { %936 = vmatpush3.bf16.msra.mxu1 %v935_v18 }
 0x11e   :  { %937 = vmatprep.subr.bf16.mxu1 %v990_v0 }
 0x121   :  { %939 = vmatpush3.bf16.msra.mxu1 %v938_v34 }
 0x122   :  { %940 = vmatprep.subr.bf16.mxu1 %v990_v0 }
 0x125   :  { %942 = vmatpush3.bf16.msra.mxu1 %v941_v37 }
 0x126   :  { %955 = vmatprep.subr.bf16.mxu1 %v990_v0 }
 0x1db   :  { %v250_v26 = vpop.f32.mrb[0].mxu1 }
 0x1dc   :  { %v251_v27 = vadd.f32 %v250_v26, %v177_v24  ;;  %v252_v28 = vpop.f32.mrb[1].mxu1 }
 0x1dd   :  { %v253_v29 = vadd.f32 %v252_v28, %v181_v25 }
 0x1de   :  { %v255_v31 = vmax.f32 %v251_v27, 0.0 }
 0x1df   :  { %v256_v30 = vmax.f32 %v253_v29, 0.0 }
 0x1e1   :  { %360 = vmatprep.mubr.f32.mxu0 %v256_v30 }
 0x1e2   :  { %361 = vmatmul.mubr.f32.vlgmr.msra.gmra.mrb[2].mxu0 %v255_v31 }
 0x1e3   :  { %817 = vmatprep.mubr.msk.f32.mxu0 %vm991_vm0, %v992_v1  ;;  %945 = vmatpush3.bf16.msra.mxu0 %v944_v41 }
 0x1e4   :  { %946 = vmatprep.subr.bf16.mxu0 %v990_v0 }
 0x1e7   :  { %948 = vmatpush3.bf16.msra.mxu0 %v947_v43 }
 0x1e8   :  { %949 = vmatprep.subr.bf16.mxu0 %v990_v0 }
 0x1eb   :  { %951 = vmatpush3.bf16.msra.mxu0 %v950_v46 }
 0x1ec   :  { %952 = vmatprep.subr.bf16.mxu0 %v990_v0 }
 0x1ef   :  { %954 = vmatpush3.bf16.msra.mxu0 %v953_v55 }
 0x2b5   :  { %v697_v47 = vpop.f32.mrb[2].mxu0 }
 0x2b6   :  { %v698_v49 = vpop.f32.mrb[3].mxu0 }
 0x2b7   :  { %v699_v50 = vadd.f32 %v698_v49, %v697_v47 }
 0x2b9   :  { %v363_v51 = vadd.f32 %v699_v50, %v642_v48 }
 0x2bb   :  { %v366_v52 = vmax.f32 %v363_v51, 0.0 }
 0x2bd   :  { %799 = vmatmul.mubr.f32.vlgmr.msra.gmra.mrb[2].mxu1 %v366_v52 }
 0x2be   :  { %828 = vmatprep.mubr.msk.f32.mxu1 %vm991_vm0, %v992_v1  ;;  %957 = vmatpush3.bf16.msra.mxu1 %v956_v58  ;;  %v643_v1 = vld [vmem:[%s1450_s7] ss:$0 sm:$0xff] }
 0x2bf   :  { %958 = vmatprep.subr.bf16.mxu1 %v990_v0  ;;  %v644_v0 = vld [vmem:[%s1452_s9] ss:$0 sm:$0xff] }
 0x2c2   :  { %960 = vmatpush3.bf16.msra.mxu1 %v959_v3 }
 0x390   :  { %v456_v59 = vpop.f32.mrb[2].mxu1 }
 0x391   :  { %v457_v60 = vadd.f32 %v643_v1, %v456_v59  ;;  %v800_v61 = vpop.f32.mrb[3].mxu1 }
 0x393   :  { %v460_v62 = vmax.f32 %v457_v60, 0.0 }
 0x395   :  { %818 = vmatmul.mubr.msk.f32.vlgmr.msra.gmra.mrb[4].mxu0 %vm476_vm1, %v460_v62 }
 0x468   :  { %v546_v4 = vpop.f32.mrb[4].mxu0 }
 0x469   :  { %v547_v5 = vadd.f32 %v644_v0, %v546_v4  ;;  %v819_v6 = vpop.f32.mrb[5].mxu0 }
 0x46b   :  { %v550_v7 = vmax.f32 %v547_v5, 0.0 }
 0x46d   :  { %829 = vmatmul.mubr.msk.f32.vlgmr.msra.gmra.mrb[4].mxu1 %vm562_vm2, %v550_v7 }
 0x540   :  { %v632_v9 = vpop.f32.mrb[4].mxu1 }
 0x541   :  { %v633_v10 = vadd.f32 %v646_v8, %v632_v9  ;;  %v830_v11 = vpop.f32.mrb[5].mxu1 }
 0x543   :  { %636 = vst [vmem:[%s1455_s12] sm:$0xff] %v633_v10 }
 0x544   :  { %641 = vsyncpa [#allocation3], 1 }

</bundles_post_ra>
